<compile_context>
chip_gen: v5e
topology: v5e:2x2
jax: 0.10.0
libtpu: 0.0.40
codegen_flags: <defaults>
</compile_context>

<pallas_src>
import jax
import jax.numpy as jnp
import numpy as np
from jax.experimental import pallas as pl
from jax.experimental.pallas import tpu as pltpu

EPS = 1e-5  # eps used by both BatchNorm2d and InstanceNorm2d defaults


def make_conv_ibn_relu_kernel(N, HWo, Cout, Cb, K):
    """Builds the Pallas kernel with static shape constants closed over."""
    inv_count_bn = 1.0 / float(N * HWo)   # BatchNorm: mean over (N, H, W)
    inv_count_in = 1.0 / float(HWo)       # InstanceNorm: mean over (H, W)

    def kernel(patch_ref, w_ref, gamma_ref, beta_ref, o_ref,
               y_buf, bn_sum, bn_sumsq):
        p = pl.program_id(0)   # phase: 0 = conv + stats, 1 = normalize
        n = pl.program_id(1)   # image index

        @pl.when(jnp.logical_and(p == 0, n == 0))
        def _init():
            bn_sum[...] = jnp.zeros_like(bn_sum)
            bn_sumsq[...] = jnp.zeros_like(bn_sumsq)

        @pl.when(p == 0)
        def _conv_phase():
            # Single MXU contraction: (Cout, K) @ (K, HWo) -> (Cout, HWo).
            # Lane axis = HWo (multiple of 128) -> lane-dense layout.
            y = jnp.dot(w_ref[...], patch_ref[0],
                        preferred_element_type=jnp.float32)
            y_buf[n] = y
            # Fused statistics epilogue while y is resident (f32 sums; values
            # are O(1) here so E[x^2]-E[x]^2 cancellation is not a concern).
            bn_sum[...] += jnp.sum(y, axis=1, keepdims=True)
            bn_sumsq[...] += jnp.sum(y * y, axis=1, keepdims=True)

        @pl.when(p == 1)
        def _norm_phase():
            y = y_buf[n]                                   # (Cout, HWo)

            # BatchNorm (training-mode biased batch stats, affine).
            mu_b = bn_sum[...] * inv_count_bn              # (Cout, 1)
            var_b = jnp.maximum(
                bn_sumsq[...] * inv_count_bn - mu_b * mu_b, 0.0)
            scale_bn = gamma_ref[...] * jax.lax.rsqrt(var_b + EPS)
            shift_bn = beta_ref[...] - mu_b * scale_bn

            # InstanceNorm (per-sample, per-channel biased stats, no affine);
            # two-pass form on the VMEM-resident tile for robustness.
            mu_i = jnp.sum(y, axis=1, keepdims=True) * inv_count_in
            d = y - mu_i
            var_i = jnp.sum(d * d, axis=1, keepdims=True) * inv_count_in
            scale_in = jax.lax.rsqrt(var_i + EPS)
            shift_in = -mu_i * scale_in

            # Select BN vs IN per channel (sublane axis) — no split/concat.
            cidx = jax.lax.broadcasted_iota(jnp.int32, (Cout, 1), 0)
            is_bn = cidx < Cb
            scale = jnp.where(is_bn, scale_bn, scale_in)
            shift = jnp.where(is_bn, shift_bn, shift_in)

            # Fused normalize + ReLU, single traversal, lane-dense store.
            o_ref[0] = jnp.maximum(y * scale + shift, 0.0).astype(o_ref.dtype)

    return kernel


def conv2d_ibnorm_relu(x_nchw, weight_oihw, bias, gamma, beta, *, padding=1):
    """PyTorch-equivalent forward: Conv2d(bias=True) -> IBNorm -> ReLU.

    `bias` is accepted for API parity but intentionally not used: it cancels
    exactly under IBNorm's mean subtraction (BN over (N,H,W), IN over (H,W)).
    """
    N, Cin, H, W = x_nchw.shape
    Cout, _, KH, KW = weight_oihw.shape
    Ho = H + 2 * padding - KH + 1
    Wo = W + 2 * padding - KW + 1
    HWo = Ho * Wo
    K = KH * KW * Cin
    Cb = Cout // 2
    del bias  # provably a no-op under IBNorm; dead work otherwise.

    # ---- Wrapper glue (plain JAX/XLA): pad + im2col + weight reshape ----
    x = x_nchw.astype(jnp.float32)
    xp = jnp.pad(x, ((0, 0), (0, 0), (padding, padding), (padding, padding)))
    taps = [xp[:, :, kh:kh + Ho, kw:kw + Wo]
            for kh in range(KH) for kw in range(KW)]          # each (N,Cin,Ho,Wo)
    patches = jnp.stack(taps, axis=1).reshape(N, K, HWo)      # K idx = tap*Cin+c
    w_mat = jnp.transpose(weight_oihw, (0, 2, 3, 1)) \
               .reshape(Cout, K).astype(jnp.float32)          # same K ordering

    # gamma/beta padded to full Cout so the kernel can mask-select; the
    # IN-channel entries are never used.  (Cout,1) matches the sublane layout.
    gamma_full = jnp.concatenate(
        [gamma.astype(jnp.float32), jnp.ones((Cout - Cb,), jnp.float32)]
    ).reshape(Cout, 1)
    beta_full = jnp.concatenate(
        [beta.astype(jnp.float32), jnp.zeros((Cout - Cb,), jnp.float32)]
    ).reshape(Cout, 1)

    # ---- VMEM budget sized from the actual tile footprint ----
    f32b = 4
    footprint = (
        2 * K * HWo * f32b            # patches block, double-buffered
        + Cout * K * f32b             # weights (resident)
        + 2 * 8 * 128 * f32b          # gamma/beta (each pads to one vreg tile)
        + 2 * Cout * HWo * f32b       # output block, double-buffered
        + N * Cout * HWo * f32b       # y_buf scratch
        + 2 * 8 * 128 * f32b          # bn_sum / bn_sumsq scratch
    )
    vmem_limit = int(min(48 * 2**20, max(4 * 2**20, 2 * footprint)))

    kernel = make_conv_ibn_relu_kernel(N, HWo, Cout, Cb, K)

    out_flat = pl.pallas_call(
        kernel,
        out_shape=jax.ShapeDtypeStruct((N, Cout, HWo), jnp.float32),
        grid=(2, N),
        in_specs=[
            # Phase 0 streams image n; phase 1 pins the block at N-1 so no
            # wasted re-DMA of unused patches occurs during normalization.
            pl.BlockSpec((1, K, HWo),
                         lambda p, n: ((1 - p) * n + p * (N - 1), 0, 0)),
            pl.BlockSpec((Cout, K), lambda p, n: (0, 0)),     # weights
            pl.BlockSpec((Cout, 1), lambda p, n: (0, 0)),     # gamma
            pl.BlockSpec((Cout, 1), lambda p, n: (0, 0)),     # beta
        ],
        # Phase 0 parks the output on block 0 and never writes it; phase 1
        # writes block n.  Block-index runs stay consecutive, so each output
        # block is written back exactly once, with the normalized values.
        out_specs=pl.BlockSpec((1, Cout, HWo), lambda p, n: (p * n, 0, 0)),
        scratch_shapes=[
            pltpu.VMEM((N, Cout, HWo), jnp.float32),   # raw conv results
            pltpu.VMEM((Cout, 1), jnp.float32),        # BN sum
            pltpu.VMEM((Cout, 1), jnp.float32),        # BN sum of squares
        ],
        compiler_params=pltpu.CompilerParams(
            dimension_semantics=("arbitrary", "arbitrary"),
            vmem_limit_bytes=vmem_limit),
    )(patches, w_mat, gamma_full, beta_full)

    # Output is already NCHW-flat: reshape only, no transpose.
    return out_flat.reshape(N, Cout, Ho, Wo)


def reference(x_nchw, weight_oihw, bias, gamma, beta, *, padding=1):
    """Pure-JAX reference matching PyTorch semantics (training-mode BN)."""
    y = jax.lax.conv_general_dilated(
        x_nchw, weight_oihw, window_strides=(1, 1),
        padding=[(padding, padding), (padding, padding)],
        dimension_numbers=('NCHW', 'OIHW', 'NCHW'))
    Cout = weight_oihw.shape[0]
    Cb = Cout // 2
    y = y + bias.reshape(1, Cout, 1, 1)
    yb, yi = y[:, :Cb], y[:, Cb:]
    mu = yb.mean(axis=(0, 2, 3), keepdims=True)
    var = ((yb - mu) ** 2).mean(axis=(0, 2, 3), keepdims=True)
    yb = (yb - mu) / jnp.sqrt(var + EPS) * gamma.reshape(1, Cb, 1, 1) \
         + beta.reshape(1, Cb, 1, 1)
    mui = yi.mean(axis=(2, 3), keepdims=True)
    vari = ((yi - mui) ** 2).mean(axis=(2, 3), keepdims=True)
    yi = (yi - mui) / jnp.sqrt(vari + EPS)
    return jnp.maximum(jnp.concatenate([yb, yi], axis=1), 0.0)


if __name__ == "__main__":
    # Module config: Conv2dIBNormRelu(in=4, out=8, kernel=3, stride=1,
    #                                 padding=1, bias=True, with_ibn, with_relu)
    N, Cin, H, W = 2, 4, 16, 16
    Cout, KH, KW = 8, 3, 3
    Cb = Cout // 2

    key = jax.random.PRNGKey(0)
    kx, kw, kb = jax.random.split(key, 3)

    x = jax.random.normal(kx, (N, Cin, H, W), dtype=jnp.float32)
    fan_in = Cin * KH * KW
    bound = 1.0 / np.sqrt(fan_in)
    weight = jax.random.uniform(kw, (Cout, Cin, KH, KW), jnp.float32,
                                -bound, bound)
    bias = jax.random.uniform(kb, (Cout,), jnp.float32, -bound, bound)
    gamma = jnp.ones((Cb,), jnp.float32)   # BatchNorm2d affine defaults
    beta = jnp.zeros((Cb,), jnp.float32)

    out = conv2d_ibnorm_relu(x, weight, bias, gamma, beta, padding=1)
    out = jax.block_until_ready(out)

    ref = reference(x, weight, bias, gamma, beta, padding=1)
    np.testing.assert_allclose(np.asarray(out), np.asarray(ref),
                               rtol=1e-4, atol=1e-4)
    print("KERNEL_OK")
</pallas_src>

<mosaic_0001>
module attributes {stable_mosaic.version = 11 : i64} {
  func.func @kernel(%arg0: i32, %arg1: i32, %arg2: memref<1x36x256xf32, #tpu.memory_space<vmem>>, %arg3: memref<8x36xf32, #tpu.memory_space<vmem>>, %arg4: memref<8x1xf32, #tpu.memory_space<vmem>>, %arg5: memref<8x1xf32, #tpu.memory_space<vmem>>, %arg6: memref<1x8x256xf32, #tpu.memory_space<vmem>>, %arg7: memref<2x8x256xf32, #tpu.memory_space<vmem>>, %arg8: memref<8x1xf32, #tpu.memory_space<vmem>>, %arg9: memref<8x1xf32, #tpu.memory_space<vmem>>) attributes {dimension_semantics = [#tpu.dimension_semantics<arbitrary>, #tpu.dimension_semantics<arbitrary>], iteration_bounds = array<i64: 2, 2>, scalar_prefetch = 0 : i64, scratch_operands = 3 : i64, tpu.core_type = #tpu.core_type<tc>, window_params = [{transform_indices = @transform_0, window_bounds = array<i64: 1, 36, 256>}, {pipeline_mode = #tpu.pipeline_mode<synchronous>, transform_indices = @transform_1, window_bounds = array<i64: 8, 36>}, {pipeline_mode = #tpu.pipeline_mode<synchronous>, transform_indices = @transform_2, window_bounds = array<i64: 8, 1>}, {pipeline_mode = #tpu.pipeline_mode<synchronous>, transform_indices = @transform_3, window_bounds = array<i64: 8, 1>}, {transform_indices = @transform_4, window_bounds = array<i64: 1, 8, 256>}]} {
    %c0_i32 = arith.constant 0 : i32
    %0 = arith.cmpi eq, %arg0, %c0_i32 : i32
    %c0_i32_0 = arith.constant 0 : i32
    %1 = arith.cmpi eq, %arg1, %c0_i32_0 : i32
    %2 = arith.andi %0, %1 : i1
    %3 = arith.extui %2 : i1 to i32
    %c0_i32_1 = arith.constant 0 : i32
    %4 = arith.cmpi ne, %3, %c0_i32_1 : i32
    scf.if %4 {
      %cst = arith.constant 0.000000e+00 : f32
      %11 = vector.broadcast %cst : f32 to vector<8x1xf32>
      %c0 = arith.constant 0 : index
      %c0_5 = arith.constant 0 : index
      %12 = vector.load %arg8[%c0, %c0_5] : memref<8x1xf32, #tpu.memory_space<vmem>>, vector<8x1xf32>
      tpu.vector_store %arg8[%c0, %c0_5], %11 {strides = array<i32>} : memref<8x1xf32, #tpu.memory_space<vmem>>, vector<8x1xf32>,
      %cst_6 = arith.constant 0.000000e+00 : f32
      %13 = vector.broadcast %cst_6 : f32 to vector<8x1xf32>
      %c0_7 = arith.constant 0 : index
      %c0_8 = arith.constant 0 : index
      %14 = vector.load %arg9[%c0_7, %c0_8] : memref<8x1xf32, #tpu.memory_space<vmem>>, vector<8x1xf32>
      tpu.vector_store %arg9[%c0_7, %c0_8], %13 {strides = array<i32>} : memref<8x1xf32, #tpu.memory_space<vmem>>, vector<8x1xf32>,
    } else {
    }
    %c0_i32_2 = arith.constant 0 : i32
    %5 = arith.cmpi eq, %arg0, %c0_i32_2 : i32
    %6 = arith.extui %5 : i1 to i32
    %c0_i32_3 = arith.constant 0 : i32
    %7 = arith.cmpi ne, %6, %c0_i32_3 : i32
    scf.if %7 {
      %c0 = arith.constant 0 : index
      %c0_5 = arith.constant 0 : index
      %11 = vector.load %arg3[%c0, %c0_5] : memref<8x36xf32, #tpu.memory_space<vmem>>, vector<8x36xf32>
      %c0_6 = arith.constant 0 : index
      %c0_7 = arith.constant 0 : index
      %c0_8 = arith.constant 0 : index
      %12 = vector.load %arg2[%c0_6, %c0_7, %c0_8] : memref<1x36x256xf32, #tpu.memory_space<vmem>>, vector<1x36x256xf32>
      %13 = vector.shape_cast %12 : vector<1x36x256xf32> to vector<36x256xf32>
      %cst = arith.constant dense<0.000000e+00> : vector<8x256xf32>
      %14 = tpu.matmul %11, %13, %cst {dimension_numbers = #tpu.dot_dimension_numbers<[1], [0], [0], [1], [0, 0, 1, 1], [], []>} : vector<8x36xf32>, vector<36x256xf32>, vector<8x256xf32> -> vector<8x256xf32>
      %15 = arith.index_cast %arg1 : i32 to index
      %c0_9 = arith.constant 0 : index
      %c0_10 = arith.constant 0 : index
      %16 = vector.load %arg7[%15, %c0_9, %c0_10] : memref<2x8x256xf32, #tpu.memory_space<vmem>>, vector<1x8x256xf32>
      %17 = vector.shape_cast %16 : vector<1x8x256xf32> to vector<8x256xf32>
      %18 = vector.shape_cast %14 : vector<8x256xf32> to vector<1x8x256xf32>
      tpu.vector_store %arg7[%15, %c0_9, %c0_10], %18 {strides = array<i32>} : memref<2x8x256xf32, #tpu.memory_space<vmem>>, vector<1x8x256xf32>,
      %c0_11 = arith.constant 0 : index
      %c0_12 = arith.constant 0 : index
      %19 = vector.load %arg8[%c0_11, %c0_12] : memref<8x1xf32, #tpu.memory_space<vmem>>, vector<8x1xf32>
      %cst_13 = arith.constant dense<0.000000e+00> : vector<8xf32>
      %20 = vector.multi_reduction <add>, %14, %cst_13 [1] : vector<8x256xf32> to vector<8xf32>
      %21 = vector.shape_cast %20 : vector<8xf32> to vector<8x1xf32>
      %22 = arith.addf %19, %21 : vector<8x1xf32>
      %c0_14 = arith.constant 0 : index
      %c0_15 = arith.constant 0 : index
      %23 = vector.load %arg8[%c0_14, %c0_15] : memref<8x1xf32, #tpu.memory_space<vmem>>, vector<8x1xf32>
      tpu.vector_store %arg8[%c0_14, %c0_15], %22 {strides = array<i32>} : memref<8x1xf32, #tpu.memory_space<vmem>>, vector<8x1xf32>,
      %c0_16 = arith.constant 0 : index
      %c0_17 = arith.constant 0 : index
      %24 = vector.load %arg9[%c0_16, %c0_17] : memref<8x1xf32, #tpu.memory_space<vmem>>, vector<8x1xf32>
      %25 = arith.mulf %14, %14 : vector<8x256xf32>
      %cst_18 = arith.constant dense<0.000000e+00> : vector<8xf32>
      %26 = vector.multi_reduction <add>, %25, %cst_18 [1] : vector<8x256xf32> to vector<8xf32>
      %27 = vector.shape_cast %26 : vector<8xf32> to vector<8x1xf32>
      %28 = arith.addf %24, %27 : vector<8x1xf32>
      %c0_19 = arith.constant 0 : index
      %c0_20 = arith.constant 0 : index
      %29 = vector.load %arg9[%c0_19, %c0_20] : memref<8x1xf32, #tpu.memory_space<vmem>>, vector<8x1xf32>
      tpu.vector_store %arg9[%c0_19, %c0_20], %28 {strides = array<i32>} : memref<8x1xf32, #tpu.memory_space<vmem>>, vector<8x1xf32>,
    } else {
    }
    %c1_i32 = arith.constant 1 : i32
    %8 = arith.cmpi eq, %arg0, %c1_i32 : i32
    %9 = arith.extui %8 : i1 to i32
    %c0_i32_4 = arith.constant 0 : i32
    %10 = arith.cmpi ne, %9, %c0_i32_4 : i32
    scf.if %10 {
      %11 = arith.index_cast %arg1 : i32 to index
      %c0 = arith.constant 0 : index
      %c0_5 = arith.constant 0 : index
      %12 = vector.load %arg7[%11, %c0, %c0_5] : memref<2x8x256xf32, #tpu.memory_space<vmem>>, vector<1x8x256xf32>
      %13 = vector.shape_cast %12 : vector<1x8x256xf32> to vector<8x256xf32>
      %c0_6 = arith.constant 0 : index
      %c0_7 = arith.constant 0 : index
      %14 = vector.load %arg8[%c0_6, %c0_7] : memref<8x1xf32, #tpu.memory_space<vmem>>, vector<8x1xf32>
      %cst = arith.constant 0.001953125 : f32
      %15 = vector.broadcast %cst : f32 to vector<8x1xf32>
      %16 = arith.mulf %14, %15 : vector<8x1xf32>
      %c0_8 = arith.constant 0 : index
      %c0_9 = arith.constant 0 : index
      %17 = vector.load %arg9[%c0_8, %c0_9] : memref<8x1xf32, #tpu.memory_space<vmem>>, vector<8x1xf32>
      %cst_10 = arith.constant 0.001953125 : f32
      %18 = vector.broadcast %cst_10 : f32 to vector<8x1xf32>
      %19 = arith.mulf %17, %18 : vector<8x1xf32>
      %20 = arith.mulf %16, %16 : vector<8x1xf32>
      %21 = arith.subf %19, %20 : vector<8x1xf32>
      %cst_11 = arith.constant 0.000000e+00 : f32
      %22 = vector.broadcast %cst_11 : f32 to vector<8x1xf32>
      %23 = arith.maximumf %21, %22 : vector<8x1xf32>
      %c0_12 = arith.constant 0 : index
      %c0_13 = arith.constant 0 : index
      %24 = vector.load %arg4[%c0_12, %c0_13] : memref<8x1xf32, #tpu.memory_space<vmem>>, vector<8x1xf32>
      %cst_14 = arith.constant 9.99999974E-6 : f32
      %25 = vector.broadcast %cst_14 : f32 to vector<8x1xf32>
      %26 = arith.addf %23, %25 : vector<8x1xf32>
      %27 = math.rsqrt %26 : vector<8x1xf32>
      %28 = arith.mulf %24, %27 : vector<8x1xf32>
      %c0_15 = arith.constant 0 : index
      %c0_16 = arith.constant 0 : index
      %29 = vector.load %arg5[%c0_15, %c0_16] : memref<8x1xf32, #tpu.memory_space<vmem>>, vector<8x1xf32>
      %30 = arith.mulf %16, %28 : vector<8x1xf32>
      %31 = arith.subf %29, %30 : vector<8x1xf32>
      %cst_17 = arith.constant dense<0.000000e+00> : vector<8xf32>
      %32 = vector.multi_reduction <add>, %13, %cst_17 [1] : vector<8x256xf32> to vector<8xf32>
      %33 = vector.shape_cast %32 : vector<8xf32> to vector<8x1xf32>
      %cst_18 = arith.constant 3.906250e-03 : f32
      %34 = vector.broadcast %cst_18 : f32 to vector<8x1xf32>
      %35 = arith.mulf %33, %34 : vector<8x1xf32>
      %36 = vector.broadcast %35 : vector<8x1xf32> to vector<8x256xf32>
      %37 = arith.subf %13, %36 : vector<8x256xf32>
      %38 = arith.mulf %37, %37 : vector<8x256xf32>
      %cst_19 = arith.constant dense<0.000000e+00> : vector<8xf32>
      %39 = vector.multi_reduction <add>, %38, %cst_19 [1] : vector<8x256xf32> to vector<8xf32>
      %40 = vector.shape_cast %39 : vector<8xf32> to vector<8x1xf32>
      %cst_20 = arith.constant 3.906250e-03 : f32
      %41 = vector.broadcast %cst_20 : f32 to vector<8x1xf32>
      %42 = arith.mulf %40, %41 : vector<8x1xf32>
      %cst_21 = arith.constant 9.99999974E-6 : f32
      %43 = vector.broadcast %cst_21 : f32 to vector<8x1xf32>
      %44 = arith.addf %42, %43 : vector<8x1xf32>
      %45 = math.rsqrt %44 : vector<8x1xf32>
      %cst_22 = arith.constant 0.000000e+00 : f32
      %46 = vector.broadcast %cst_22 : f32 to vector<8x1xf32>
      %47 = arith.subf %46, %35 : vector<8x1xf32>
      %48 = arith.mulf %47, %45 : vector<8x1xf32>
      %49 = tpu.iota {dimensions = array<i32: 0>} : vector<8x1xi32>
      %c4_i32 = arith.constant 4 : i32
      %50 = vector.broadcast %c4_i32 : i32 to vector<8x1xi32>
      %51 = arith.cmpi slt, %49, %50 : vector<8x1xi32>
      %52 = arith.select %51, %28, %45 : vector<8x1xi1>, vector<8x1xf32>
      %53 = arith.select %51, %31, %48 : vector<8x1xi1>, vector<8x1xf32>
      %54 = vector.broadcast %52 : vector<8x1xf32> to vector<8x256xf32>
      %55 = arith.mulf %13, %54 : vector<8x256xf32>
      %56 = vector.broadcast %53 : vector<8x1xf32> to vector<8x256xf32>
      %57 = arith.addf %55, %56 : vector<8x256xf32>
      %cst_23 = arith.constant 0.000000e+00 : f32
      %58 = vector.broadcast %cst_23 : f32 to vector<8x256xf32>
      %59 = arith.maximumf %57, %58 : vector<8x256xf32>
      %c0_24 = arith.constant 0 : index
      %c0_25 = arith.constant 0 : index
      %c0_26 = arith.constant 0 : index
      %60 = vector.load %arg6[%c0_24, %c0_25, %c0_26] : memref<1x8x256xf32, #tpu.memory_space<vmem>>, vector<1x8x256xf32>
      %61 = vector.shape_cast %60 : vector<1x8x256xf32> to vector<8x256xf32>
      %62 = vector.shape_cast %59 : vector<8x256xf32> to vector<1x8x256xf32>
      tpu.vector_store %arg6[%c0_24, %c0_25, %c0_26], %62 {strides = array<i32>} : memref<1x8x256xf32, #tpu.memory_space<vmem>>, vector<1x8x256xf32>,
    } else {
    }
    return
  }
  func.func @transform_0(%arg0: i32, %arg1: i32) -> (i32, i32, i32) {
    %c1_i32 = arith.constant 1 : i32
    %0 = arith.subi %c1_i32, %arg0 : i32
    %1 = arith.muli %0, %arg1 : i32
    %c1_i32_0 = arith.constant 1 : i32
    %2 = arith.muli %arg0, %c1_i32_0 : i32
    %3 = arith.addi %1, %2 : i32
    %c0_i32 = arith.constant 0 : i32
    %c0_i32_1 = arith.constant 0 : i32
    %c0_i32_2 = arith.constant 0 : i32
    return %3, %c0_i32, %c0_i32_1 : i32, i32, i32
  }
  func.func @transform_1(%arg0: i32, %arg1: i32) -> (i32, i32) {
    %c0_i32 = arith.constant 0 : i32
    %c0_i32_0 = arith.constant 0 : i32
    %c0_i32_1 = arith.constant 0 : i32
    return %c0_i32, %c0_i32_0 : i32, i32
  }
  func.func @transform_2(%arg0: i32, %arg1: i32) -> (i32, i32) {
    %c0_i32 = arith.constant 0 : i32
    %c0_i32_0 = arith.constant 0 : i32
    %c0_i32_1 = arith.constant 0 : i32
    return %c0_i32, %c0_i32_0 : i32, i32
  }
  func.func @transform_3(%arg0: i32, %arg1: i32) -> (i32, i32) {
    %c0_i32 = arith.constant 0 : i32
    %c0_i32_0 = arith.constant 0 : i32
    %c0_i32_1 = arith.constant 0 : i32
    return %c0_i32, %c0_i32_0 : i32, i32
  }
  func.func @transform_4(%arg0: i32, %arg1: i32) -> (i32, i32, i32) {
    %0 = arith.muli %arg0, %arg1 : i32
    %c0_i32 = arith.constant 0 : i32
    %c0_i32_0 = arith.constant 0 : i32
    %c0_i32_1 = arith.constant 0 : i32
    return %0, %c0_i32, %c0_i32_0 : i32, i32, i32
  }
}

</mosaic_0001>

<bundles_post_ra>
// kernel: tpu_custom_call.1
= control target key start
LH: loop header
LB: loop body
LE: loop exit
PB: predicated region body
PF: predicated region fallthrough
CT: control target
= control target key end

     0   :  { %9 = vsyncpa [#allocation6], 0  ;;  %s881_s0 = inlined_call_operand.vmem [shape: f32[2,36,256], index: 0, kind: input, shape index: {}]   ;;  %s882_s1 = inlined_call_operand.vmem [shape: f32[8,36], index: 1, kind: input, shape index: {}]   ;;  %s883_s2 = inlined_call_operand.vmem [shape: f32[8,1], index: 2, kind: input, shape index: {}]   ;;  %s884_s3 = inlined_call_operand.vmem [shape: f32[8,1], index: 3, kind: input, shape index: {}]   ;;  %s885_s4 = inlined_call_operand.hbm [shape: f32[2,8,256], index: 4, kind: output, shape index: {}]  }
   0x1   :  { %11 = vsyncpa [#allocation6 + $0x1], 0  ;;  %s726_s15 = smov 0   ;;  %s728_s16 = smov 0  }
   0x2   :  { %s730_s17 = smov 0   ;;  %s732_s18 = smov 0  }
   0x3   :  { %s734_s19 = smov 0   ;;  %s736_s20 = smov 0  }
   0x4   :  { %s738_s21 = smov 0   ;;  %s740_s22 = smov 0  }
   0x5 LB: > { %s498_s23 = sadd.s32 4294967295, %s697_s22   ;;  %s499_s24 = sadd.s32 4294967294, %s697_s22   ;;  %s697_s22 = sphi %s740_s22, %s17_s22   ;;  %s693_s21 = sphi %s738_s21, %s894_s21   ;;  %s689_s20 = sphi %s736_s20, %s893_s20   ;;  %s685_s19 = sphi %s734_s19, %s892_s19   ;;  %s681_s18 = sphi %s732_s18, %s891_s18   ;;  %s677_s17 = sphi %s730_s17, %s890_s17   ;;  %s673_s16 = sphi %s728_s16, %s889_s16   ;;  %s669_s15 = sphi %s726_s15, %s888_s15  }
   0x6   : > { %s26_s25 = sadd.s32 1, %s689_s20  ;;  %s29_s26 = sadd.s32 1, %s693_s21 }
   0x7   : > { %p27_p0 = scmp.ge.s32.totalorder %s26_s25, 2  ;;  %s128_s27 = smul.u32 %s689_s20, %s693_s21 }
   0x8   : > { %p143_p1 = scmp.ne.s32.totalorder %s677_s17, %s673_s16  ;;  %p144_p2 = scmp.eq.s32.totalorder %s498_s23, 3 }
   0x9   : > { %s896_s25 = smov (%p27_p0, %s26_s25), 0  ;;  %s898_s26 = smov (!%p27_p0, %s29_s26), %s693_s21 }
   0xa   : > { %p149_p3 = scmp.ne.s32.totalorder %s673_s16, %s669_s15  ;;  %p31_p4 = scmp.ge.s32.totalorder %s898_s26, 2 }
   0xb   : > { %p150_p5 = scmp.eq.s32.totalorder %s499_s24, 3  ;;  %p779_p6 = por %p144_p2, %p143_p1 }
   0xc   : > { %p502_p7 = scmp.ge.s32.totalorder %s697_s22, 1  ;;  %s900_s26 = smov (%p31_p4, %s898_s26), 0 }
   0xd   : > { %p786_p8 = por %p150_p5, %p149_p3  ;;  %p191_p9 = scmp.lt.s32.totalorder %s697_s22, 5 }
   0xe   : > { %s129_s30 = smul.u32 %s900_s26, %s896_s25  ;;  %s133_s6 = sadd.s32 1, %s677_s17 }
   0xf   : > { %p192_p10 = pnand %p502_p7, %p191_p9 }
  0x10   : > { %s130_s5 = ssub.s32 %s128_s27, %s129_s30  ;;  %s217_s8 = sand.u32 (!%p192_p10), 1, %s673_s16  }
  0x11   : > { %p131_p11 = scmp.eq.s32.totalorder %s130_s5, 0  ;;  %195 = sbr.rel (%p192_p10) target bundleno = 724 (0x2d4), region = 36 }
  0x12   : > { %s220_s9 = ssub.s32 (!%p192_p10), 1, %s685_s19  ;;  %s503_s10 = sshll.u32 (!%p192_p10), %s217_s8, 4 }
  0x13   : > { %s795_s7 = scalar_select %p131_p11, %s677_s17, %s133_s6  }
  0x14   : > { %s221_s11 = smul.u32 (!%p192_p10), %s681_s18, %s220_s9  ;;  %p232_p12 = scmp.eq.s32.totalorder (!%p192_p10), %s685_s19, 0 }
  0x15   : > { %p233_p13 = scmp.eq.s32.totalorder (!%p192_p10), %s681_s18, 0  ;;  %s808_s27 = scalar_lea.vmem (!%p192_p10), [#allocation5], %s503_s10 }
  0x16   : > { %s222_s12 = sadd.s32 %s685_s19, %s221_s11 }
  0x17   : > { %p223_p0 = scmp.lt.s32.totalorder %s222_s12, 1  ;;  %p234_p1 = pnand %p233_p13, %p232_p12 }
  0x19   : > { %s902_s12 = smov (!%p223_p0, %s222_s12), 1  ;;  %237 = sbr.rel (%p234_p1) target bundleno = 33 (0x21), region = 40 }
  0x1a   : > { %s523_s13 = smul.u32 80, %s902_s12 }
  0x1c   : > { %s227_s24 = scalar_lea.vmem %s881_s0, %s523_s13 }
  0x1e   : > { %vm238_vm0 = vcmask 7168   ;;  %v699_v0 = vmov 0.0  }
  0x1f   : > { %239 = vst.msk [vmem:[#allocation3] sm:$0xff] %vm238_vm0, %v699_v0 }
  0x20   : > { %240 = vst.msk [vmem:[#allocation4] sm:$0xff] %vm238_vm0, %v699_v0 }
  0x21 PF: > { %p505_p2 = scmp.ne.s32.totalorder %s685_s19, 0 }
  0x22   : > { %s520_s6 = sshll.u32 (!%p505_p2), %s681_s18, 4 }
  0x23   : > { %243 = sbr.rel (%p505_p2) target bundleno = 305 (0x131), region = 44  ;;  %s308_s9 = scalar_lea.vmem (!%p505_p2), [#allocation2], %s520_s6 }
  0x28   : > { %v253_v1 = vld [vmem:[%s227_s24 + $0x40] sm:$0xf]  ;;  %vm259_vm1 = vcmask 1043456   ;;  %v254_v2 = vld [vmem:[%s227_s24 + $0x48] sm:$0xf]  ;;  %v251_v3 = vld [vmem:[%s227_s24 + $0x30] sm:$0xff] }
  0x29   : > { %506 = vmatpush.msk.msra.mxu0 %vm259_vm1, %v253_v1  ;;  %508 = vmatpush.msk.msra.mxu1 %vm259_vm1, %v254_v2  ;;  %v252_v4 = vld [vmem:[%s227_s24 + $0x38] sm:$0xff]  ;;  %v249_v5 = vld [vmem:[%s227_s24 + $0x20] sm:$0xff]  ;;  %v250_v6 = vld [vmem:[%s227_s24 + $0x28] sm:$0xff]  ;;  %vm255_vm2 = vcmask 293888   ;;  %vm316_vm3 = vcmask 7168  }
  0x2a   : > { %v247_v7 = vld [vmem:[%s227_s24 + $0x10] sm:$0xff]  ;;  %v248_v8 = vld [vmem:[%s227_s24 + $0x18] sm:$0xff]  ;;  %v245_v9 = vld [vmem:[%s227_s24] sm:$0xff] }
  0x2b   : > { %278 = vmatpush.msra.mxu0 %v251_v3  ;;  %298 = vmatpush.msra.mxu1 %v252_v4  ;;  %v246_v10 = vld [vmem:[%s227_s24 + $0x8] sm:$0xff]  ;;  %v244_v11 = vld [vmem:[%s882_s1] sm:$0xff] }
  0x2c   : > { %v311_v18 = vld [vmem:[#allocation3] sm:$0xff]  ;;  %v318_v21 = vld [vmem:[#allocation4] sm:$0xff] }
  0x2d   : > { %279 = vmatpush.msra.mxu0 %v249_v5  ;;  %299 = vmatpush.msra.mxu1 %v250_v6 }
  0x2f   : > { %280 = vmatpush.msra.mxu0 %v247_v7  ;;  %300 = vmatpush.msra.mxu1 %v248_v8 }
  0x31   : > { %281 = vmatpush.msra.mxu0 %v245_v9  ;;  %301 = vmatpush.msra.mxu1 %v246_v10 }
  0x32   : > { %507 = vmatmul.msk.f32.vlgmr.msra.gmra.mxu0 %vm255_vm2, %v244_v11  ;;  %509 = vmatmul.msk.f32.vlgmr.msra.gmra.mxu1 %vm255_vm2, %v244_v11 }
  0xaf   : > { %v283_v12 = vpop.f32.mrf.mxu0  ;;  %v303_v13 = vpop.f32.mrf.mxu1 }
  0xb0   : > { %309 = vst [vmem:[%s308_s9] sm:$0xff] %v283_v12  ;;  %v312_v14 = vadd.f32 %v303_v13, %v283_v12  ;;  %v319_v15 = vmul.f32 %v283_v12, %v283_v12  ;;  %v320_v16 = vmul.f32 %v303_v13, %v303_v13 }
  0xb1   : > { %310 = vst [vmem:[%s308_s9 + $0x8] sm:$0xff] %v303_v13 }
  0xb2   : > { %313 = vadd.xlane.f32.xlu0 %v312_v14  ;;  %v321_v17 = vadd.f32 %v320_v16, %v319_v15 }
  0xba   : > { %322 = vadd.xlane.f32.xlu0 %v321_v17 }
 0x125   : > { %v314_v19 = vpop.xlane.xlu0 %313 }
 0x126   : > { %v315_v20 = vadd.f32 %v314_v19, %v311_v18 }
 0x128   : > { %317 = vst.msk [vmem:[#allocation3] sm:$0xff] %vm316_vm3, %v315_v20 }
 0x12d   : > { %v323_v22 = vpop.xlane.xlu0 %322 }
 0x12e   : > { %v324_v23 = vadd.f32 %v323_v22, %v318_v21 }
 0x130   : > { %325 = vst.msk [vmem:[#allocation4] sm:$0xff] %vm316_vm3, %v324_v23 }
 0x131 PF: > { %p512_p3 = scmp.ne.s32.totalorder %s685_s19, 1 }
 0x132   : > { %s521_s10 = sshll.u32 (!%p512_p3), %s681_s18, 4 }
 0x133   : > { %329 = sbr.rel (%p512_p3) target bundleno = 707 (0x2c3), region = 48  ;;  %s332_s11 = scalar_lea.vmem (!%p512_p3), [#allocation2], %s521_s10 }
 0x138   : > { %v817_v24 = vld [vmem:[%s332_s11] sm:$0xff]  ;;  %v819_v25 = vld [vmem:[%s332_s11 + $0x8] sm:$0xff]  ;;  %v700_v42 = vmov 0   ;;  %v383_v54 = vlaneseq }
 0x139   : > { %v358_v26 = vadd.f32 %v819_v25, %v817_v24  ;;  %v335_v34 = vld [vmem:[#allocation3] sm:$0xff]  ;;  %v337_v36 = vld [vmem:[#allocation4] sm:$0xff]  ;;  %597 = vset.pattern.permute.xlu1 %v700_v42  ;;  %598 = vset.pattern.permute.xlu0 %v700_v42 }
 0x13a   : > { %v336_v35 = vmul.f32 0.001953125, %v335_v34  ;;  %v338_v37 = vmul.f32 0.001953125, %v337_v36  ;;  %v342_v57 = vld [vmem:[%s883_s2] sm:$0xff]  ;;  %v384_v59 = vshrl.u32 %v383_v54, 7 }
 0x13b   : > { %359 = vadd.xlane.f32.xlu0 %v358_v26  ;;  %v355_v2 = vld [vmem:[%s884_s3] sm:$0xff] }
 0x13c   : > { %v339_v38 = vmul.f32 %v336_v35, %v336_v35  ;;  %vm385_vm9 = vcmp.lt.s32.totalorder %v384_v59, 4 }
 0x13e   : > { %v340_v39 = vsub.f32 %v338_v37, %v339_v38 }
 0x140   : > { %v341_v40 = vmax.f32 %v340_v39, 0.0 }
 0x142   : > { %v343_v41 = vadd.f32 1e-05, %v341_v40 }
 0x144   : > { %599 = vrsqrt.f32 %v343_v41  ;;  %vm350_vm4 = vweird.f32 %v343_v41 }
 0x14a   : > { %v600_v43 = vpop.eup %599 }
 0x14b   : > { %v345_v44 = vmul.f32 %v600_v43, %v343_v41  ;;  %vm351_vm5 = vweird.f32 %v600_v43 }
 0x14c   : > { %vm352_vm6 = vmor %vm350_vm4, %vm351_vm5 }
 0x14d   : > { %v346_v46 = vmul.f32 %v600_v43, %v345_v44 }
 0x14f   : > { %v347_v49 = vmul.f32 0.5, %v346_v46 }
 0x151   : > { %v348_v50 = vsub.f32 1.5, %v347_v49 }
 0x153   : > { %v349_v53 = vmul.f32 %v600_v43, %v348_v50 }
 0x155   : > { %v353_v58 = vsel %vm352_vm6, %v600_v43, %v349_v53 }
 0x156   : > { %v354_v61 = vmul.f32 %v353_v58, %v342_v57 }
 0x158   : > { %v356_v0 = vmul.f32 %v354_v61, %v336_v35 }
 0x15a   : > { %v357_v5 = vsub.f32 %v355_v2, %v356_v0 }
 0x1ae   : > { %v360_v27 = vpop.xlane.xlu0 %359 }
 0x1af   : > { %v361_v28 = vmul.f32 0.00390625, %v360_v27 }
 0x1b1   : > { %v362_v29 = vsub.f32 %v817_v24, %v361_v28  ;;  %v363_v30 = vsub.f32 %v819_v25, %v361_v28  ;;  %v381_v3 = vsub.f32 0.0, %v361_v28 }
 0x1b3   : > { %v364_v31 = vmul.f32 %v362_v29, %v362_v29  ;;  %v365_v32 = vmul.f32 %v363_v30, %v363_v30 }
 0x1b5   : > { %v366_v33 = vadd.f32 %v365_v32, %v364_v31 }
 0x1b7   : > { %367 = vadd.xlane.f32.xlu0 %v366_v33 }
 0x22a   : > { %v368_v45 = vpop.xlane.xlu0 %367 }
 0x22b   : > { %v369_v47 = vmul.f32 0.00390625, %v368_v45 }
 0x22d   : > { %v370_v48 = vadd.f32 1e-05, %v369_v47 }
 0x22f   : > { %601 = vrsqrt.f32 %v370_v48  ;;  %vm377_vm8 = vweird.f32 %v370_v48 }
 0x235   : > { %v602_v51 = vpop.eup %601 }
 0x236   : > { %v372_v52 = vmul.f32 %v602_v51, %v370_v48  ;;  %vm378_vm7 = vweird.f32 %v602_v51 }
 0x237   : > { %vm379_vm10 = vmor %vm377_vm8, %vm378_vm7 }
 0x238   : > { %v373_v55 = vmul.f32 %v602_v51, %v372_v52 }
 0x23a   : > { %v374_v56 = vmul.f32 0.5, %v373_v55 }
 0x23c   : > { %v375_v60 = vsub.f32 1.5, %v374_v56 }
 0x23e   : > { %v376_v62 = vmul.f32 %v602_v51, %v375_v60 }
 0x240   : > { %v380_v63 = vsel %vm379_vm10, %v602_v51, %v376_v62 }
 0x241   : > { %v386_v1 = vsel %vm385_vm9, %v354_v61, %v380_v63  ;;  %v382_v4 = vmul.f32 %v381_v3, %v380_v63 }
 0x242   : > { %390 = vperm.xlu1 %597, %v386_v1  }
 0x243   : > { %v387_v6 = vsel %vm385_vm9, %v357_v5, %v382_v4 }
 0x24a   : > { %397 = vperm.xlu1 %597, %v387_v6  }
 0x2b4   : > { %v391_v7 = vpop.permute.xlu1 %390 }
 0x2b5   : > { %v393_v8 = vmul.f32 %v391_v7, %v817_v24  ;;  %v394_v9 = vmul.f32 %v391_v7, %v819_v25 }
 0x2bc   : > { %v398_v10 = vpop.permute.xlu1 %397 }
 0x2bd   : > { %v400_v11 = vadd.f32 %v398_v10, %v393_v8  ;;  %v401_v12 = vadd.f32 %v398_v10, %v394_v9 }
 0x2bf   : > { %v402_v13 = vmax.f32 %v400_v11, 0.0  ;;  %v403_v14 = vmax.f32 %v401_v12, 0.0 }
 0x2c1   : > { %404 = vst [vmem:[%s808_s27] sm:$0xff] %v402_v13 }
 0x2c2   : > { %405 = vst [vmem:[%s808_s27 + $0x8] sm:$0xff] %v403_v14 }
 0x2c3 PF: > { %s414_s24 = smul.u32 %s681_s18, %s685_s19  ;;  %s421_s30 = sshll.u32 %s808_s27, 4  ;;  %s422_s30 = int_to_ptr.vmem [resolvable:$true] %s421_s30 }
 0x2c4   : > { %s407_s12 = scalar_lea.sflag [#allocation6], %s217_s8  ;;  %s623_s19 = scalar_lea.hbm %s885_s4, 32 }
 0x2c5   : > { %s522_s5 = sshll.u32 %s414_s24, 4 }
 0x2c6   : > { %s419_s10 = scalar_lea.hbm %s885_s4, %s522_s5 }
 0x2c7   : > { %s423_s11 = sshll.u32 %s419_s10, 4  ;;  %s424_s11 = int_to_ptr.hbm [resolvable:$true] %s423_s11 }
 0x2c8   : > { %s617_s13 = sshra.s32 %s424_s11, 4  ;;  %s618_s13 = int_to_ptr.hbm [resolvable:$true] %s617_s13 }
 0x2c9   : > { %s619_s14 = scalar_lea.hbm %s618_s13, 16  ;;  %p624_p9 = scmp.lt.s32.totalorder %s618_s13, %s885_s4 }
 0x2ca   : > { %p620_p4 = scmp.ne.s32.totalorder %s618_s13, %s619_s14  ;;  %p625_p10 = scmp.lt.s32.totalorder %s623_s19, %s619_s14 }
 0x2cc   : > { %p621_p5 = pnand %p620_p4, %p779_p6  ;;  %p626_p11 = por %p625_p10, %p624_p9 }
 0x2ce   : > { %p622_p7 = pneg %p621_p5 }
 0x2d0   : > { %p627_p12 = pnand %p626_p11, %p622_p7 }
 0x2d2   : > { %630 = shalt.err (!%p627_p12)
}
 0x2d3   : > { %524 = dma.vmem_to_hbm [thread:$0]  (%p779_p6), %s422_s30, 256, %s424_s11, %s407_s12  }
 0x2d4 PF: > { %p530_p13 = scmp.ge.s32.totalorder %s697_s22, 2  ;;  %s435_s8 = sand.u32 1, %s669_s15  }
 0x2d5   : > { %s436_s5 = scalar_lea.sflag [#allocation6], %s435_s8 }
 0x2d6   : > { %p527_p0 = pnand %p530_p13, %p786_p8 }
 0x2d8   : > { %p528_p1 = pneg %p527_p0 }
 0x2da   : > { %664 = dma.done.wait (%p528_p1), %s436_s5, 256  }
 0x2db   : > { %666 = vsyncadd (%p528_p1), %s436_s5, 4294967040  ;;  %s17_s22 = sadd.s32 1, %s697_s22   ;;  %s888_s15 = smov %s673_s16 }
 0x2dc   : > { %p14_p2 = scmp.ge.s32.totalorder %s17_s22, 6   ;;  %s889_s16 = smov %s677_s17 }
 0x2dd   : > { %s890_s17 = smov %s795_s7  ;;  %s891_s18 = smov %s689_s20 }
 0x2de   : > { %s892_s19 = smov %s693_s21  ;;  %s893_s20 = smov %s896_s25 }
 0x2df   : > { %s894_s21 = smov %s900_s26  ;;  %16 = sbr.rel (!%p14_p2) target bundleno = 5 (0x5), region = 85 }
 0x2e4   :  { %442 = vsyncpa [#allocation6], 1 }
 0x2e5   :  { %444 = vsyncpa [#allocation6 + $0x1], 1 }

</bundles_post_ra>
